<compile_context>
chip_gen: v5e
topology: v5e:2x2
jax: 0.10.0
libtpu: 0.0.40
codegen_flags: <defaults>
</compile_context>

<pallas_src>
import math

import jax
import jax.numpy as jnp
from jax.experimental import pallas as pl
from jax.experimental.pallas import tpu as pltpu


def embedding_kernel(ids_ref, table_ref, pos_ref, o_ref):
    # ids_ref:   (S, 1)  int32   token ids for the current batch element
    # table_ref: (V, D)  float32 embedding table (sqrt(d_model) pre-folded),
    #                            resident across grid steps (constant index_map)
    # pos_ref:   (S, D)  float32 positional encoding, resident across grid steps
    # o_ref:     (S, D)  output tile for the current batch element
    ids = ids_ref[...]                                   # (S, 1)
    s = ids_ref.shape[0]
    v = table_ref.shape[0]

    # One-hot gather on the MXU: (S, V) @ (V, D) -> (S, D).
    # HIGHEST precision keeps the f32 table exact (multi-pass f32 matmul).
    # NOTE: out-of-range ids (>= V or < 0) yield an all-zero row here, whereas
    # nn.Embedding would raise; ids are assumed in-range.
    col = jax.lax.broadcasted_iota(jnp.int32, (s, v), 1)
    onehot = (col == ids).astype(table_ref.dtype)
    tok = jnp.dot(onehot, table_ref[...],
                  preferred_element_type=jnp.float32,
                  precision=jax.lax.Precision.HIGHEST)

    # Positional-encoding add.  Dropout with p=0 is the identity.
    # TODO(synk): if dr_rate > 0, implement dropout in this same kernel via
    # pltpu.prng_seed / pltpu.prng_random_bits (VPU/EUP slots are idle here);
    # the synthetic instance uses dr_rate = 0.
    o_ref[...] = (tok + pos_ref[...]).astype(o_ref.dtype)


def sinusoidal_encoding(max_len, d_model, dtype=jnp.float32):
    """Standard Transformer sinusoidal positional encoding buffer (max_len, d_model)."""
    position = jnp.arange(max_len, dtype=jnp.float32)[:, None]
    div_term = jnp.exp(jnp.arange(0, d_model, 2, dtype=jnp.float32)
                       * (-math.log(10000.0) / d_model))
    ang = position * div_term
    enc = jnp.zeros((max_len, d_model), jnp.float32)
    enc = enc.at[:, 0::2].set(jnp.sin(ang))
    enc = enc.at[:, 1::2].set(jnp.cos(ang))
    return enc.astype(dtype)


def transformer_embedding(ids, table, pos_enc):
    """ids: (B, S) int32; table: (V, D) with sqrt(D) folded in; pos_enc: (>=S, D)."""
    B, S = ids.shape
    V, D = table.shape
    assert pos_enc.shape[0] >= S, (
        f"sequence length {S} exceeds positional-encoding buffer {pos_enc.shape[0]}")
    BS = B * S

    ids_flat = ids.reshape(BS, 1).astype(jnp.int32)
    pos_s = pos_enc[:S]                                   # (S, D) -- no batch tiling

    cost = pl.CostEstimate(
        flops=2 * BS * V * D,                             # one-hot matmuls
        transcendentals=0,
        bytes_accessed=(BS + V * D + S * D + BS * D) * 4,
    )

    out_flat = pl.pallas_call(
        embedding_kernel,
        out_shape=jax.ShapeDtypeStruct((BS, D), table.dtype),
        grid_spec=pltpu.PrefetchScalarGridSpec(
            num_scalar_prefetch=0,
            grid=(B,),                                    # one step per batch element
            in_specs=[
                pl.BlockSpec((S, 1), lambda b: (b, 0)),   # per-batch token ids
                pl.BlockSpec((V, D), lambda b: (0, 0)),   # table: fetched once, resident
                pl.BlockSpec((S, D), lambda b: (0, 0)),   # PE: fetched once, resident
            ],
            out_specs=pl.BlockSpec((S, D), lambda b: (b, 0)),
        ),
        compiler_params=pltpu.CompilerParams(
            dimension_semantics=("parallel",)),           # batches independent -> megacore
        cost_estimate=cost,
    )(ids_flat, table, pos_s)

    return out_flat.reshape(B, S, D)


def ref_transformer_embedding(ids, raw_table, pos_enc, d_model):
    """Pure-JAX reference mirroring the PyTorch forward pass (dropout p=0)."""
    S = ids.shape[1]
    tok = raw_table[ids] * math.sqrt(d_model)             # nn.Embedding lookup + scale
    return tok + pos_enc[None, :S, :]                     # positional encoding add


if __name__ == "__main__":
    B, S, V, D = 2, 8, 128, 128      # batch, seq, vocab, d_model
    MAX_LEN = 64                     # positional-encoding buffer length

    key = jax.random.PRNGKey(0)
    k_tab, k_ids = jax.random.split(key)

    raw_table = jax.random.normal(k_tab, (V, D), jnp.float32) * 0.02
    ids = jax.random.randint(k_ids, (B, S), 0, V, dtype=jnp.int32)
    pos_enc = sinusoidal_encoding(MAX_LEN, D)

    # Fold the TokenEmbedding sqrt(d_model) scale into the table at init
    # (parameter-construction-time constant fold; no in-kernel multiply).
    table = raw_table * math.sqrt(D)

    out = transformer_embedding(ids, table, pos_enc)
    out = jax.block_until_ready(out)

    ref = ref_transformer_embedding(ids, raw_table, pos_enc, D)
    assert out.shape == (B, S, D)
    assert jnp.allclose(out, ref, atol=1e-5, rtol=1e-5), "mismatch vs reference"

    print("KERNEL_OK")
</pallas_src>

<mosaic_0001>
module attributes {stable_mosaic.version = 11 : i64} {
  func.func @embedding_kernel(%arg0: i32, %arg1: memref<8x1xi32, #tpu.memory_space<vmem>>, %arg2: memref<128x128xf32, #tpu.memory_space<vmem>>, %arg3: memref<8x128xf32, #tpu.memory_space<vmem>>, %arg4: memref<8x128xf32, #tpu.memory_space<vmem>>) attributes {dimension_semantics = [#tpu.dimension_semantics<parallel>], iteration_bounds = array<i64: 2>, scalar_prefetch = 0 : i64, scratch_operands = 0 : i64, tpu.core_type = #tpu.core_type<tc>, window_params = [{transform_indices = @transform_0, window_bounds = array<i64: 8, 1>}, {pipeline_mode = #tpu.pipeline_mode<synchronous>, transform_indices = @transform_1, window_bounds = array<i64: 128, 128>}, {pipeline_mode = #tpu.pipeline_mode<synchronous>, transform_indices = @transform_2, window_bounds = array<i64: 8, 128>}, {transform_indices = @transform_3, window_bounds = array<i64: 8, 128>}]} {
    %c0 = arith.constant 0 : index
    %c0_0 = arith.constant 0 : index
    %0 = vector.load %arg1[%c0, %c0_0] : memref<8x1xi32, #tpu.memory_space<vmem>>, vector<8x1xi32>
    %1 = tpu.iota {dimensions = array<i32: 1>} : vector<8x128xi32>
    %2 = vector.broadcast %0 : vector<8x1xi32> to vector<8x128xi32>
    %3 = arith.cmpi eq, %1, %2 : vector<8x128xi32>
    %4 = arith.extui %3 : vector<8x128xi1> to vector<8x128xi32>
    %5 = arith.sitofp %4 : vector<8x128xi32> to vector<8x128xf32>
    %c0_1 = arith.constant 0 : index
    %c0_2 = arith.constant 0 : index
    %6 = vector.load %arg2[%c0_1, %c0_2] : memref<128x128xf32, #tpu.memory_space<vmem>>, vector<128x128xf32>
    %cst = arith.constant dense<0.000000e+00> : vector<8x128xf32>
    %7 = tpu.matmul %5, %6, %cst {dimension_numbers = #tpu.dot_dimension_numbers<[1], [0], [0], [1], [0, 0, 1, 1], [], []>, precision = #tpu.contract_precision<fp32>} : vector<8x128xf32>, vector<128x128xf32>, vector<8x128xf32> -> vector<8x128xf32>
    %c0_3 = arith.constant 0 : index
    %c0_4 = arith.constant 0 : index
    %8 = vector.load %arg3[%c0_3, %c0_4] : memref<8x128xf32, #tpu.memory_space<vmem>>, vector<8x128xf32>
    %9 = arith.addf %7, %8 : vector<8x128xf32>
    %c0_5 = arith.constant 0 : index
    %c0_6 = arith.constant 0 : index
    %10 = vector.load %arg4[%c0_5, %c0_6] : memref<8x128xf32, #tpu.memory_space<vmem>>, vector<8x128xf32>
    tpu.vector_store %arg4[%c0_5, %c0_6], %9 {strides = array<i32>} : memref<8x128xf32, #tpu.memory_space<vmem>>, vector<8x128xf32>,
    return
  }
  func.func @transform_0(%arg0: i32) -> (i32, i32) {
    %c0_i32 = arith.constant 0 : i32
    %c0_i32_0 = arith.constant 0 : i32
    return %arg0, %c0_i32 : i32, i32
  }
  func.func @transform_1(%arg0: i32) -> (i32, i32) {
    %c0_i32 = arith.constant 0 : i32
    %c0_i32_0 = arith.constant 0 : i32
    %c0_i32_1 = arith.constant 0 : i32
    return %c0_i32, %c0_i32_0 : i32, i32
  }
  func.func @transform_2(%arg0: i32) -> (i32, i32) {
    %c0_i32 = arith.constant 0 : i32
    %c0_i32_0 = arith.constant 0 : i32
    %c0_i32_1 = arith.constant 0 : i32
    return %c0_i32, %c0_i32_0 : i32, i32
  }
  func.func @transform_3(%arg0: i32) -> (i32, i32) {
    %c0_i32 = arith.constant 0 : i32
    %c0_i32_0 = arith.constant 0 : i32
    return %arg0, %c0_i32 : i32, i32
  }
}

</mosaic_0001>

<bundles_post_ra>
// kernel: tpu_custom_call.1
= control target key start
LH: loop header
LB: loop body
LE: loop exit
PB: predicated region body
PF: predicated region fallthrough
CT: control target
= control target key end

     0   :  { %8 = vsyncpa [#allocation3], 0  ;;  %s1160_s0 = inlined_call_operand.vmem [shape: s32[16,1], index: 0, kind: input, shape index: {}]   ;;  %s1161_s1 = inlined_call_operand.hbm [shape: f32[128,128], index: 1, kind: input, shape index: {}]   ;;  %s1162_s2 = inlined_call_operand.vmem [shape: f32[8,128], index: 2, kind: input, shape index: {}]   ;;  %s1163_s3 = inlined_call_operand.hbm [shape: f32[16,128], index: 3, kind: output, shape index: {}]  }
   0x1   :  { %9 = vsyncpa [#allocation4], 0 }
   0x2   :  { %11 = vsyncpa [#allocation4 + $0x1], 0  ;;  %s834_s12 = smov 0   ;;  %s836_s13 = smov 0  }
   0x3   :  { %s838_s14 = smov 0   ;;  %s840_s15 = smov 0  }
   0x4 LB: > { %s855_s16 = sadd.s32 4294967295, %s806_s15   ;;  %s638_s17 = sadd.s32 4294967294, %s806_s15   ;;  %s806_s15 = sphi %s840_s15, %s1169_s15   ;;  %s802_s14 = sphi %s838_s14, %s1168_s14   ;;  %s798_s13 = sphi %s836_s13, %s1167_s13   ;;  %s794_s12 = sphi %s834_s12, %s1166_s12  }
   0x5   : > { %s859_s18 = sadd.s32 1, %s806_s15   ;;  %s92_s19 = sadd.s32 1, %s802_s14 }
   0x6   : > { %s89_s20 = ssub.s32 %s806_s15, %s859_s18  ;;  %p102_p0 = scmp.ne.s32.totalorder %s802_s14, %s798_s13 }
   0x7   : > { %p90_p1 = scmp.eq.s32.totalorder %s89_s20, 0  ;;  %p103_p2 = scmp.eq.s32.totalorder %s855_s16, 1 }
   0x8   : > { %p108_p3 = scmp.ne.s32.totalorder %s798_s13, %s794_s12  ;;  %p109_p4 = scmp.eq.s32.totalorder %s638_s17, 1 }
   0x9   : > { %s870_s21 = scalar_select %p90_p1, %s802_s14, %s92_s19  }
   0xa   : > { %p872_p5 = por %p103_p2, %p102_p0  ;;  %p876_p6 = por %p109_p4, %p108_p3 }
   0xb   : > { %p639_p7 = scmp.ge.s32.totalorder %s806_s15, 1  ;;  %p116_p8 = scmp.lt.s32.totalorder %s806_s15, 3 }
   0xc   : > { %p668_p9 = scmp.eq.s32.totalorder %s855_s16, 0  ;;  %s127_s26 = sshll.u32 %s1161_s1, 4  ;;  %s128_s26 = int_to_ptr.hbm [resolvable:$true] %s127_s26 }
   0xd   : > { %p117_p10 = pnand %p639_p7, %p116_p8  ;;  %s808_s27 = smov [#allocation2]  }
   0xe   : > { %s129_s28 = sshll.u32 %s808_s27, 4  ;;  %s809_s29 = smov 128   ;;  %s130_s28 = int_to_ptr.vmem [resolvable:$true] %s129_s28 }
   0xf   : > { %p660_p11 = pneg %p117_p10  ;;  %s810_s30 = smov 8  }
  0x10   : > { %155 = sbr.rel (%p117_p10) target bundleno = 295 (0x127), region = 32 }
  0x11   : > { %p661_p12 = pnand %p668_p9, %p660_p11 }
  0x13   : > { %663 = dma.hbm_to_vmem [thread:$0]  (!%p661_p12), %s128_s26, 2048, %s130_s28, [#allocation3], %s809_s29, %s809_s29, %s810_s30  }
  0x15   : > { %785 = dma.done.wait (%p668_p9), [#allocation3], 2048  }
  0x16   : > { %787 = vsyncadd (%p668_p9), [#allocation3], 4294965248  ;;  %p179_p13 = scmp.lt.s32.totalorder %s855_s16, 1  ;;  %v811_v0 = vmov 0   ;;  %v207_v2 = vld [vmem:[#allocation2 + $0x78] sm:$0xff]  ;;  %v206_v3 = vld [vmem:[#allocation2 + $0x70] sm:$0xff] }
  0x17   : > { %709 = vset.pattern.permute.xlu0 %v811_v0  ;;  %v897_v4 = vand.u32 4294901760, %v207_v2  ;;  %v899_v5 = vand.u32 4294901760, %v206_v3  ;;  %v205_v6 = vld [vmem:[#allocation2 + $0x68] sm:$0xff]  ;;  %v204_v7 = vld [vmem:[#allocation2 + $0x60] sm:$0xff]  ;;  %v203_v8 = vld [vmem:[#allocation2 + $0x58] sm:$0xff]  ;;  %s176_s11 = sand.u32 1, %s798_s13  }
  0x18   : > { %s180_s4 = scalar_select %p179_p13, %s855_s16, 1  ;;  %v901_v9 = vand.u32 4294901760, %v205_v6  ;;  %v903_v10 = vand.u32 4294901760, %v204_v7  ;;  %v905_v11 = vand.u32 4294901760, %v203_v8  ;;  %v202_v12 = vld [vmem:[#allocation2 + $0x50] sm:$0xff]  ;;  %v201_v13 = vld [vmem:[#allocation2 + $0x48] sm:$0xff] }
  0x19   : > { %v200_v14 = vld [vmem:[#allocation2 + $0x40] sm:$0xff]  ;;  %v908_v15 = vsub.f32 %v207_v2, %v897_v4  ;;  %v911_v16 = vsub.f32 %v206_v3, %v899_v5  ;;  %210 = vmatpush.msra.mxu0 %v897_v4  ;;  %v914_v17 = vand.u32 4294901760, %v202_v12  ;;  %v916_v18 = vand.u32 4294901760, %v201_v13  ;;  %406 = vmatpush.msra.mxu3 %v897_v4  ;;  %v199_v35 = vld [vmem:[#allocation2 + $0x38] sm:$0xff]  ;;  %v198_v36 = vld [vmem:[#allocation2 + $0x30] sm:$0xff]  ;;  %s644_s17 = sshll.u32 %s176_s11, 3 }
  0x1a   : > { %s645_s5 = sshll.u32 %s180_s4, 3  ;;  %v920_v19 = vsub.f32 %v205_v6, %v901_v9  ;;  %v923_v20 = vsub.f32 %v204_v7, %v903_v10  ;;  %v926_v21 = vsub.f32 %v203_v8, %v905_v11  ;;  %v928_v22 = vand.u32 4294901760, %v200_v14  ;;  %v197_v40 = vld [vmem:[#allocation2 + $0x28] sm:$0xff]  ;;  %v196_v42 = vld [vmem:[#allocation2 + $0x20] sm:$0xff]  ;;  %v195_v50 = vld [vmem:[#allocation2 + $0x18] sm:$0xff]  ;;  %s651_s19 = sshll.u32 %s855_s16, 3 }
  0x1b   : > { %s182_s8 = scalar_lea.vmem %s1160_s0, %s645_s5  ;;  %v252_v23 = vand.u32 4294901760, %v908_v15  ;;  %v258_v24 = vand.u32 4294901760, %v911_v16  ;;  %v933_v25 = vsub.f32 %v202_v12, %v914_v17  ;;  %212 = vmatpush.msra.mxu0 %v899_v5  ;;  %353 = vmatpush.msra.mxu2 %v908_v15  ;;  %v940_v28 = vsub.f32 %v201_v13, %v916_v18  ;;  %v194_v56 = vld [vmem:[#allocation2 + $0x10] sm:$0xff]  ;;  %v193_v62 = vld [vmem:[#allocation2 + $0x8] sm:$0xff]  ;;  %v192_v6 = vld [vmem:[#allocation2] sm:$0xff]  ;;  %s562_s25 = scalar_lea.hbm %s1163_s3, %s651_s19 }
  0x1c   : > { %v183_v1 = vld [vmem:[%s182_s8] sm:$0xff]  ;;  %v264_v26 = vand.u32 4294901760, %v920_v19  ;;  %v270_v27 = vand.u32 4294901760, %v923_v20  ;;  %408 = vmatpush.msra.mxu3 %v899_v5  ;;  %v276_v31 = vand.u32 4294901760, %v926_v21  ;;  %v957_v34 = vsub.f32 %v200_v14, %v928_v22  ;;  %s178_s26 = scalar_lea.vmem [#allocation5], %s644_s17  ;;  %s566_s28 = sshll.u32 %s562_s25, 4  ;;  %s567_s28 = int_to_ptr.hbm [resolvable:$true] %s566_s28 }
  0x1d   : > { %187 = vperm.xlu0 %709, %v183_v1   ;;  %v253_v29 = vsub.f32 %v908_v15, %v252_v23  ;;  %v259_v30 = vsub.f32 %v911_v16, %v258_v24  ;;  %214 = vmatpush.msra.mxu0 %v901_v9  ;;  %v282_v33 = vand.u32 4294901760, %v933_v25  ;;  %v288_v41 = vand.u32 4294901760, %v940_v28  ;;  %s564_s27 = sshll.u32 %s178_s26, 4  ;;  %s552_s16 = scalar_lea.sflag [#allocation4], %s176_s11  ;;  %s565_s27 = int_to_ptr.vmem [resolvable:$true] %s564_s27 }
  0x1e   : > { %356 = vmatpush.msra.mxu2 %v911_v16  ;;  %v265_v32 = vsub.f32 %v920_v19, %v264_v26  ;;  %410 = vmatpush.msra.mxu3 %v901_v9  ;;  %v271_v39 = vsub.f32 %v923_v20, %v270_v27  ;;  %v277_v44 = vsub.f32 %v926_v21, %v276_v31  ;;  %v970_v45 = vand.u32 4294901760, %v199_v35  ;;  %s754_s29 = sshra.s32 %s567_s28, 4  ;;  %s760_s6 = scalar_lea.hbm %s1163_s3, 16  ;;  %s755_s29 = int_to_ptr.hbm [resolvable:$true] %s754_s29 }
  0x1f   : > { %v254_v37 = vand.u32 4294901760, %v253_v29  ;;  %v260_v38 = vand.u32 4294901760, %v259_v30  ;;  %216 = vmatpush.msra.mxu0 %v903_v10  ;;  %v973_v46 = vand.u32 4294901760, %v198_v36  ;;  %v283_v47 = vsub.f32 %v933_v25, %v282_v33  ;;  %s756_s30 = scalar_lea.hbm %s755_s29, 8  ;;  %p761_p3 = scmp.lt.s32.totalorder %s755_s29, %s1163_s3 }
  0x20   : > { %359 = vmatpush.msra.mxu2 %v920_v19  ;;  %412 = vmatpush.msra.mxu3 %v903_v10  ;;  %v266_v43 = vand.u32 4294901760, %v265_v32  ;;  %v294_v48 = vand.u32 4294901760, %v957_v34  ;;  %v979_v49 = vand.u32 4294901760, %v197_v40  ;;  %v272_v51 = vand.u32 4294901760, %v271_v39  ;;  %p757_p0 = scmp.ne.s32.totalorder %s755_s29, %s756_s30  ;;  %p762_p4 = scmp.lt.s32.totalorder %s760_s6, %s756_s30 }
  0x21   : > { %255 = vmatpush.msra.mxu1 %v254_v37  ;;  %218 = vmatpush.msra.mxu0 %v905_v11  ;;  %v984_v52 = vsub.f32 %v199_v35, %v970_v45  ;;  %v987_v53 = vsub.f32 %v198_v36, %v973_v46  ;;  %v990_v54 = vand.u32 4294901760, %v196_v42  ;;  %v289_v55 = vsub.f32 %v940_v28, %v288_v41 }
  0x22   : > { %362 = vmatpush.msra.mxu2 %v923_v20  ;;  %414 = vmatpush.msra.mxu3 %v905_v11  ;;  %v278_v57 = vand.u32 4294901760, %v277_v44  ;;  %v999_v59 = vsub.f32 %v197_v40, %v979_v49  ;;  %v1002_v60 = vand.u32 4294901760, %v195_v50  ;;  %v295_v61 = vsub.f32 %v957_v34, %v294_v48  ;;  %v208_v20 = vld [vmem:[%s1162_s2] sm:$0xff]  ;;  %p758_p1 = pnand %p757_p0, %p872_p5  ;;  %p763_p7 = por %p762_p4, %p761_p3 }
  0x23   : > { %261 = vmatpush.msra.mxu1 %v260_v38  ;;  %220 = vmatpush.msra.mxu0 %v914_v17  ;;  %v300_v58 = vand.u32 4294901760, %v984_v52  ;;  %v284_v63 = vand.u32 4294901760, %v283_v47  ;;  %v306_v0 = vand.u32 4294901760, %v987_v53  ;;  %v1011_v1 = vsub.f32 %v196_v42, %v990_v54 }
  0x24   : > { %365 = vmatpush.msra.mxu2 %v926_v21  ;;  %416 = vmatpush.msra.mxu3 %v914_v17  ;;  %v1014_v2 = vand.u32 4294901760, %v194_v56  ;;  %v290_v3 = vand.u32 4294901760, %v289_v55  ;;  %v312_v8 = vand.u32 4294901760, %v999_v59  ;;  %v1023_v12 = vsub.f32 %v195_v50, %v1002_v60  ;;  %p759_p2 = pneg %p758_p1 }
  0x25   : > { %267 = vmatpush.msra.mxu1 %v266_v43  ;;  %222 = vmatpush.msra.mxu0 %v916_v18  ;;  %v301_v7 = vsub.f32 %v984_v52, %v300_v58  ;;  %v1026_v13 = vand.u32 4294901760, %v193_v62  ;;  %v296_v14 = vand.u32 4294901760, %v295_v61  ;;  %v307_v29 = vsub.f32 %v987_v53, %v306_v0 }
  0x26   : > { %368 = vmatpush.msra.mxu2 %v933_v25  ;;  %418 = vmatpush.msra.mxu3 %v916_v18  ;;  %v318_v30 = vand.u32 4294901760, %v1011_v1  ;;  %v1035_v32 = vsub.f32 %v194_v56, %v1014_v2  ;;  %v1038_v35 = vand.u32 4294901760, %v192_v6  ;;  %v313_v37 = vsub.f32 %v999_v59, %v312_v8  ;;  %p764_p8 = pnand %p763_p7, %p759_p2 }
  0x27   : > { %273 = vmatpush.msra.mxu1 %v272_v51  ;;  %224 = vmatpush.msra.mxu0 %v928_v22  ;;  %v302_v36 = vand.u32 4294901760, %v301_v7  ;;  %v324_v38 = vand.u32 4294901760, %v1023_v12  ;;  %v1047_v39 = vsub.f32 %v193_v62, %v1026_v13  ;;  %v308_v40 = vand.u32 4294901760, %v307_v29 }
  0x28   : > { %371 = vmatpush.msra.mxu2 %v940_v28  ;;  %420 = vmatpush.msra.mxu3 %v928_v22  ;;  %v319_v42 = vsub.f32 %v1011_v1, %v318_v30  ;;  %v330_v43 = vand.u32 4294901760, %v1035_v32  ;;  %v1057_v44 = vsub.f32 %v192_v6, %v1038_v35  ;;  %v314_v47 = vand.u32 4294901760, %v313_v37 }
  0x29   : > { %279 = vmatpush.msra.mxu1 %v278_v57  ;;  %226 = vmatpush.msra.mxu0 %v970_v45  ;;  %v325_v50 = vsub.f32 %v1023_v12, %v324_v38  ;;  %v336_v51 = vand.u32 4294901760, %v1047_v39 }
  0x2a   : > { %374 = vmatpush.msra.mxu2 %v957_v34  ;;  %422 = vmatpush.msra.mxu3 %v970_v45  ;;  %v320_v55 = vand.u32 4294901760, %v319_v42  ;;  %v331_v56 = vsub.f32 %v1035_v32, %v330_v43  ;;  %v342_v57 = vand.u32 4294901760, %v1057_v44 }
  0x2b   : > { %285 = vmatpush.msra.mxu1 %v284_v63  ;;  %228 = vmatpush.msra.mxu0 %v973_v46  ;;  %v326_v61 = vand.u32 4294901760, %v325_v50  ;;  %v337_v62 = vsub.f32 %v1047_v39, %v336_v51 }
  0x2c   : > { %377 = vmatpush.msra.mxu2 %v984_v52  ;;  %424 = vmatpush.msra.mxu3 %v973_v46  ;;  %v332_v63 = vand.u32 4294901760, %v331_v56 }
  0x2d   : > { %291 = vmatpush.msra.mxu1 %v290_v3  ;;  %230 = vmatpush.msra.mxu0 %v979_v49  ;;  %v343_v3 = vsub.f32 %v1057_v44, %v342_v57  ;;  %v338_v6 = vand.u32 4294901760, %v337_v62 }
  0x2e   : > { %380 = vmatpush.msra.mxu2 %v987_v53  ;;  %426 = vmatpush.msra.mxu3 %v979_v49 }
  0x2f   : > { %297 = vmatpush.msra.mxu1 %v296_v14  ;;  %232 = vmatpush.msra.mxu0 %v990_v54  ;;  %v344_v7 = vand.u32 4294901760, %v343_v3 }
  0x30   : > { %383 = vmatpush.msra.mxu2 %v999_v59  ;;  %428 = vmatpush.msra.mxu3 %v990_v54 }
  0x31   : > { %303 = vmatpush.msra.mxu1 %v302_v36  ;;  %234 = vmatpush.msra.mxu0 %v1002_v60 }
  0x32   : > { %386 = vmatpush.msra.mxu2 %v1011_v1  ;;  %430 = vmatpush.msra.mxu3 %v1002_v60 }
  0x33   : > { %309 = vmatpush.msra.mxu1 %v308_v40  ;;  %236 = vmatpush.msra.mxu0 %v1014_v2 }
  0x34   : > { %389 = vmatpush.msra.mxu2 %v1023_v12  ;;  %432 = vmatpush.msra.mxu3 %v1014_v2 }
  0x35   : > { %315 = vmatpush.msra.mxu1 %v314_v47  ;;  %238 = vmatpush.msra.mxu0 %v1026_v13 }
  0x36   : > { %392 = vmatpush.msra.mxu2 %v1035_v32  ;;  %434 = vmatpush.msra.mxu3 %v1026_v13 }
  0x37   : > { %321 = vmatpush.msra.mxu1 %v320_v55  ;;  %240 = vmatpush.msra.mxu0 %v1038_v35 }
  0x38   : > { %395 = vmatpush.msra.mxu2 %v1047_v39  ;;  %436 = vmatpush.msra.mxu3 %v1038_v35 }
  0x39   : > { %447 = vmatpush.msrb.mxu0 %v252_v23  ;;  %327 = vmatpush.msra.mxu1 %v326_v61 }
  0x3a   : > { %398 = vmatpush.msra.mxu2 %v1057_v44 }
  0x3b   : > { %451 = vmatpush.msrb.mxu0 %v258_v24  ;;  %333 = vmatpush.msra.mxu1 %v332_v63 }
  0x3d   : > { %455 = vmatpush.msrb.mxu0 %v264_v26  ;;  %339 = vmatpush.msra.mxu1 %v338_v6 }
  0x3f   : > { %459 = vmatpush.msrb.mxu0 %v270_v27  ;;  %345 = vmatpush.msra.mxu1 %v344_v7 }
  0x41   : > { %514 = vmatpush.msrb.mxu1 %v897_v4  ;;  %463 = vmatpush.msrb.mxu0 %v276_v31  ;;  %v184_v4 = vlaneseq }
  0x43   : > { %516 = vmatpush.msrb.mxu1 %v899_v5  ;;  %467 = vmatpush.msrb.mxu0 %v282_v33  ;;  %v185_v5 = vand.u32 127, %v184_v4 }
  0x45   : > { %518 = vmatpush.msrb.mxu1 %v901_v9  ;;  %471 = vmatpush.msrb.mxu0 %v288_v41 }
  0x47   : > { %520 = vmatpush.msrb.mxu1 %v903_v10  ;;  %475 = vmatpush.msrb.mxu0 %v294_v48  ;;  %v812_v10 = vmov 1.0  }
  0x49   : > { %522 = vmatpush.msrb.mxu1 %v905_v11  ;;  %479 = vmatpush.msrb.mxu0 %v300_v58  ;;  %v813_v11 = vmov 0.0  }
  0x4b   : > { %524 = vmatpush.msrb.mxu1 %v914_v17  ;;  %483 = vmatpush.msrb.mxu0 %v306_v0 }
  0x4d   : > { %526 = vmatpush.msrb.mxu1 %v916_v18  ;;  %487 = vmatpush.msrb.mxu0 %v312_v8 }
  0x4f   : > { %528 = vmatpush.msrb.mxu1 %v928_v22  ;;  %491 = vmatpush.msrb.mxu0 %v318_v30 }
  0x51   : > { %530 = vmatpush.msrb.mxu1 %v970_v45  ;;  %495 = vmatpush.msrb.mxu0 %v324_v38 }
  0x53   : > { %532 = vmatpush.msrb.mxu1 %v973_v46  ;;  %499 = vmatpush.msrb.mxu0 %v330_v43 }
  0x55   : > { %534 = vmatpush.msrb.mxu1 %v979_v49  ;;  %503 = vmatpush.msrb.mxu0 %v336_v51 }
  0x57   : > { %536 = vmatpush.msrb.mxu1 %v990_v54  ;;  %507 = vmatpush.msrb.mxu0 %v342_v57 }
  0x59   : > { %538 = vmatpush.msrb.mxu1 %v1002_v60 }
  0x5b   : > { %540 = vmatpush.msrb.mxu1 %v1014_v2 }
  0x5d   : > { %542 = vmatpush.msrb.mxu1 %v1026_v13 }
  0x5f   : > { %544 = vmatpush.msrb.mxu1 %v1038_v35 }
  0x8f   : > { %v188_v9 = vpop.permute.xlu0 %187 }
  0x90   : > { %vm189_vm0 = vcmp.eq.s32.totalorder %v185_v5, %v188_v9 }
  0x91   : > { %647 = vmatmul.msk.f32.vlgmr.msra.gmra.mxu1 %vm189_vm0, %v812_v10  ;;  %v646_v15 = vsel %vm189_vm0, 1.0, %v813_v11 }
  0x92   : > { %v242_v16 = vsub.f32 %v646_v15, %v646_v15 }
  0x94   : > { %401 = vmatmul.f32.vlgmr.msra.gmra.mxu2 %v242_v16  ;;  %v243_v17 = vand.u32 4294901760, %v242_v16 }
  0x96   : > { %440 = vmatmul.f32.vlgmr.msra.gmra.mxu3 %v243_v17  ;;  %v244_v18 = vsub.f32 %v242_v16, %v243_v17 }
  0x98   : > { %v245_v19 = vand.u32 4294901760, %v244_v18 }
  0x99   : > { %649 = vmatmul.msk.f32.vlgmr.msrb.gmra.mxu1 %vm189_vm0, %v812_v10 }
  0x9a   : > { %246 = vmatmul.f32.vlgmr.msra.gmra.mxu0 %v245_v19 }
  0xa2   : > { %648 = vmatmul.msk.f32.vlgmr.msrb.gmra.mxu0 %vm189_vm0, %v812_v10 }
 0x10e   : > { %v348_v21 = vpop.f32.mrf.mxu1 }
 0x116   : > { %v547_v34 = vpop.f32.mrf.mxu1 }
 0x117   : > { %v247_v22 = vpop.f32.mrf.mxu0  ;;  %v402_v25 = vpop.f32.mrf.mxu2 }
 0x118   : > { %v248_v23 = vadd.f32 %v247_v22, %v208_v20 }
 0x119   : > { %v441_v27 = vpop.f32.mrf.mxu3 }
 0x11a   : > { %v349_v24 = vadd.f32 %v348_v21, %v248_v23 }
 0x11c   : > { %v403_v26 = vadd.f32 %v402_v25, %v349_v24 }
 0x11e   : > { %v442_v28 = vadd.f32 %v441_v27, %v403_v26 }
 0x11f   : > { %v510_v31 = vpop.f32.mrf.mxu0 }
 0x120   : > { %v511_v33 = vadd.f32 %v510_v31, %v442_v28 }
 0x122   : > { %v548_v41 = vadd.f32 %v547_v34, %v511_v33 }
 0x124   : > { %550 = vst [vmem:[%s178_s26] sm:$0xff] %v548_v41 }
 0x125   : > { %767 = shalt.err (!%p764_p8)
}
 0x126   : > { %658 = dma.vmem_to_hbm [thread:$0]  (%p872_p5), %s565_s27, 128, %s567_s28, %s552_s16  }
 0x127 PF: > { %p670_p9 = scmp.ge.s32.totalorder %s806_s15, 2  ;;  %s578_s9 = sand.u32 1, %s794_s12  }
 0x128   : > { %s579_s10 = scalar_lea.sflag [#allocation4], %s578_s9 }
 0x129   : > { %p665_p10 = pnand %p670_p9, %p876_p6 }
 0x12b   : > { %p666_p11 = pneg %p665_p10 }
 0x12d   : > { %789 = dma.done.wait (%p666_p11), %s579_s10, 128  }
 0x12e   : > { %791 = vsyncadd (%p666_p11), %s579_s10, 4294967168  ;;  %p14_p12 = scmp.ge.s32.totalorder %s859_s18, 4   ;;  %s1166_s12 = smov %s798_s13 }
 0x12f   : > { %s1167_s13 = smov %s802_s14  ;;  %s1168_s14 = smov %s870_s21 }
 0x130   : > { %s1169_s15 = smov %s859_s18  ;;  %16 = sbr.rel (!%p14_p12) target bundleno = 4 (0x4), region = 72 }
 0x135   :  { %585 = vsyncpa [#allocation3], 1 }
 0x136   :  { %587 = vsyncpa [#allocation3 + $0x1], 1 }
 0x137   :  { %588 = vsyncpa [#allocation4], 1 }
 0x138   :  { %590 = vsyncpa [#allocation4 + $0x1], 1 }

</bundles_post_ra>
